<compile_context>
chip_gen: v6e
topology: v6e:2x2x1
jax: 0.10.0
libtpu: 0.0.40
codegen_flags: <defaults>
</compile_context>

<pallas_src>
import jax
import jax.numpy as jnp
from jax.experimental import pallas as pl
from jax.experimental.pallas import tpu as pltpu


def _tpu_generation() -> int:
    """Best-effort TPU generation (4/5/6/7); 0 if unknown."""
    try:
        kind = jax.devices()[0].device_kind.lower()
    except Exception:
        return 0
    for gen in (7, 6, 5, 4):
        if f"v{gen}" in kind or f"tpu{gen}" in kind:
            return gen
    return 0


def _sublane_multiple(itemsize: int) -> int:
    # Native sublane packing: 8 rows for 32-bit, 16 for bf16, 32 for 8-bit.
    return 8 * max(1, 4 // int(itemsize))


def _make_wce_kernel(*, n_valid, tile_n, tiles_per_p, inv_n, compute_dtype,
                     has_weight):
    def kernel(*refs):
        if has_weight:
            logits_ref, targets_ref, weight_ref, out_ref, acc_ref = refs
        else:
            logits_ref, targets_ref, out_ref, acc_ref = refs
            weight_ref = None

        p = pl.program_id(0)   # parallel super-block (one per TC on v7x)
        i = pl.program_id(1)   # row tile inside the super-block ("arbitrary")

        @pl.when(i == 0)
        def _init():
            acc_ref[0] = jnp.float32(0.0)

        # Load in HBM dtype; upcast only when required (f32 inputs, or bf16 on
        # v5e which has no bf16 VPU/EUP).  On v6e/v7x bf16 stays bf16 here.
        x = logits_ref[...]
        if x.dtype != compute_dtype:
            x = x.astype(compute_dtype)
        tgt = targets_ref[...]                              # (tile_n, 1) int32

        # Numerically stable logsumexp over the class (lane) axis.
        m = jnp.max(x, axis=-1, keepdims=True)
        shifted = x - m

        # Two consumer reductions of `shifted`, back-to-back so they fuse into
        # a single pass over the tile; both accumulate in f32.
        sumexp = jnp.sum(jnp.exp(shifted).astype(jnp.float32),
                         axis=-1, keepdims=True)            # (tile_n, 1) f32
        class_ids = jax.lax.broadcasted_iota(
            jnp.int32, (1, shifted.shape[-1]), 1)           # (1, C), broadcasts
        zero = jnp.array(0, dtype=shifted.dtype)
        tgt_shifted = jnp.sum(
            jnp.where(class_ids == tgt, shifted, zero).astype(jnp.float32),
            axis=-1, keepdims=True)                         # (tile_n, 1) f32

        # ce = logsumexp - target_logit; the per-row max cancels.
        ce = jnp.log(sumexp) - tgt_shifted                  # (tile_n, 1) f32
        if has_weight:
            ce = ce * weight_ref[...]                       # per-sample weight

        # Mask ragged rows of the last tile (out-of-bounds rows are undefined).
        base = (p * tiles_per_p + i) * tile_n
        row_ids = base + jax.lax.broadcasted_iota(jnp.int32, ce.shape, 0)
        ce = jnp.where(row_ids < n_valid, ce, 0.0)

        acc_ref[0] += jnp.sum(ce)

        @pl.when(i == pl.num_programs(1) - 1)
        def _finalize():
            # Each parallel slice owns its own (8,128) output tile: partial
            # mean at [0, 0], zeros elsewhere, so the wrapper can jnp.sum().
            r = jax.lax.broadcasted_iota(jnp.int32, out_ref.shape, 0)
            c = jax.lax.broadcasted_iota(jnp.int32, out_ref.shape, 1)
            val = acc_ref[0] * jnp.float32(inv_n)
            out_ref[...] = jnp.where((r == 0) & (c == 0), val, 0.0)

    return kernel


def weighted_cross_entropy_loss(logits, targets, weight=None, *, tile_n=None):
    """JAX/Pallas equivalent of WeightedCrossEntropyLoss.forward.

    logits : (N, C) float32 or bfloat16 (kept in its HBM dtype; no wrapper cast)
    targets: (N,)   integer class indices
    weight : (N,)   per-SAMPLE weights or None (the module's self.weight)
    returns scalar float32 = mean_i(weight_i * CE_i)   (divisor is N)
    """
    n, c = logits.shape
    in_itemsize = jnp.dtype(logits.dtype).itemsize
    gen = _tpu_generation()
    targets = jnp.asarray(targets)

    # bf16 math only on chips with bf16 VPU/EUP (v6e, v7x); f32 otherwise.
    if logits.dtype == jnp.bfloat16 and gen >= 6:
        compute_dtype = jnp.bfloat16
    else:
        compute_dtype = jnp.float32
    comp_itemsize = jnp.dtype(compute_dtype).itemsize

    # VMEM working-set budget / scoped limit per generation.
    if gen in (4, 5, 6):           # 128 MiB physical VMEM
        work_budget = 44 * 1024 * 1024
        vmem_limit = 64 * 1024 * 1024
    else:                          # v7x (64 MiB) or unknown: stay conservative
        work_budget = 28 * 1024 * 1024
        vmem_limit = 48 * 1024 * 1024

    sub = _sublane_multiple(in_itemsize)
    if tile_n is None:
        # True per-row footprint: 2x double-buffered input tile + ~3 full-width
        # compute-dtype temps (shifted / exp / select) + one f32 reduce temp
        # + small per-row target/weight streams.
        bytes_per_row = c * (2 * in_itemsize + 3 * comp_itemsize + 4) + 64
        rows = work_budget // bytes_per_row
        tile_n = int(min(max(rows, sub), 32768))
    tile_n = max(sub, (int(tile_n) // sub) * sub)
    if n <= tile_n:
        tile_n = n                 # single full-array block (always legal)

    total_tiles = pl.cdiv(n, tile_n)
    # Prefer an even tile count so the 2-way parallel split always gets a
    # rectangular, fully in-bounds grid.
    if total_tiles > 1 and total_tiles % 2 == 1:
        alt = max(sub, ((pl.cdiv(n, total_tiles + 1) + sub - 1) // sub) * sub)
        if pl.cdiv(n, alt) % 2 == 0:
            tile_n, total_tiles = alt, pl.cdiv(n, alt)

    # 2-way "parallel" outer axis: v7x's two TensorCores each stream half the
    # row tiles; on 1-TC chips (v5e/v6e) it simply serializes at no cost.
    num_parallel = 2 if (total_tiles >= 2 and total_tiles % 2 == 0) else 1
    tiles_per_p = total_tiles // num_parallel
    grid = (num_parallel, tiles_per_p)

    has_weight = weight is not None
    targets2d = targets.astype(jnp.int32).reshape(n, 1)
    operands = [logits, targets2d]
    in_specs = [
        pl.BlockSpec((tile_n, c), lambda p, i, t=tiles_per_p: (p * t + i, 0)),
        pl.BlockSpec((tile_n, 1), lambda p, i, t=tiles_per_p: (p * t + i, 0)),
    ]
    if has_weight:
        operands.append(jnp.asarray(weight).astype(jnp.float32).reshape(n, 1))
        in_specs.append(
            pl.BlockSpec((tile_n, 1), lambda p, i, t=tiles_per_p: (p * t + i, 0)))

    kernel = _make_wce_kernel(
        n_valid=n, tile_n=tile_n, tiles_per_p=tiles_per_p, inv_n=1.0 / n,
        compute_dtype=compute_dtype, has_weight=has_weight)

    partials = pl.pallas_call(
        kernel,
        out_shape=jax.ShapeDtypeStruct((num_parallel * 8, 128), jnp.float32),
        grid=grid,
        in_specs=in_specs,
        # One private (8,128) f32 tile per parallel slice -> no cross-core
        # write races and always an (8,128)-aligned, legal block shape.
        out_specs=pl.BlockSpec((8, 128), lambda p, i: (p, 0)),
        scratch_shapes=[pltpu.SMEM((1,), jnp.float32)],
        compiler_params=pltpu.CompilerParams(
            dimension_semantics=("parallel", "arbitrary"),
            vmem_limit_bytes=vmem_limit,
        ),
    )(*operands)

    # Each partial tile carries (partial_sum / N) at [0, 0]; everything else 0.
    return jnp.sum(partials)


def _reference(logits, targets, weight=None):
    logits = logits.astype(jnp.float32)
    logp = jax.nn.log_softmax(logits, axis=-1)
    ce = -jnp.take_along_axis(logp, targets[:, None].astype(jnp.int32), axis=-1)[:, 0]
    if weight is not None:
        ce = ce * weight.astype(jnp.float32)
    return jnp.mean(ce)


if __name__ == "__main__":
    key = jax.random.PRNGKey(0)
    k1, k2 = jax.random.split(key)

    # Small shapes; N=13 with tile_n=8 exercises the 2-way parallel grid, the
    # SMEM accumulator init/finalize, and ragged-last-tile masking.
    N, C = 13, 32
    logits = jax.random.normal(k1, (N, C), dtype=jnp.float32)
    targets = jax.random.randint(k2, (N,), 0, C, dtype=jnp.int32)
    weight = jnp.linspace(0.5, 1.5, N, dtype=jnp.float32)

    loss = weighted_cross_entropy_loss(logits, targets, weight, tile_n=8)
    loss = jax.block_until_ready(loss)
    ref = _reference(logits, targets, weight)
    assert jnp.allclose(loss, ref, atol=1e-5, rtol=1e-5), (loss, ref)

    # bf16 logits stream in bf16 (bf16 in-kernel math on v6e/v7x, f32 on v5e).
    logits_bf16 = logits.astype(jnp.bfloat16)
    loss_bf16 = weighted_cross_entropy_loss(logits_bf16, targets, weight)
    loss_bf16 = jax.block_until_ready(loss_bf16)
    assert jnp.allclose(loss_bf16, ref, atol=5e-2, rtol=5e-2), (loss_bf16, ref)

    # weight=None path: specialized kernel without the weight stream.
    loss_nw = weighted_cross_entropy_loss(logits, targets, None, tile_n=8)
    loss_nw = jax.block_until_ready(loss_nw)
    ref_nw = _reference(logits, targets, None)
    assert jnp.allclose(loss_nw, ref_nw, atol=1e-5, rtol=1e-5), (loss_nw, ref_nw)

    print("KERNEL_OK")
</pallas_src>

<mosaic_0001>
module attributes {stable_mosaic.version = 11 : i64} {
  func.func @kernel(%arg0: i32, %arg1: i32, %arg2: memref<8x32xf32, #tpu.memory_space<vmem>>, %arg3: memref<8x1xi32, #tpu.memory_space<vmem>>, %arg4: memref<8x1xf32, #tpu.memory_space<vmem>>, %arg5: memref<8x128xf32, #tpu.memory_space<vmem>>, %arg6: memref<1xf32, #tpu.memory_space<smem>>) attributes {dimension_semantics = [#tpu.dimension_semantics<parallel>, #tpu.dimension_semantics<arbitrary>], iteration_bounds = array<i64: 2, 1>, scalar_prefetch = 0 : i64, scratch_operands = 1 : i64, tpu.core_type = #tpu.core_type<tc>, window_params = [{transform_indices = @transform_0, window_bounds = array<i64: 8, 32>}, {transform_indices = @transform_1, window_bounds = array<i64: 8, 1>}, {transform_indices = @transform_2, window_bounds = array<i64: 8, 1>}, {transform_indices = @transform_3, window_bounds = array<i64: 8, 128>}]} {
    %c0_i32 = arith.constant 0 : i32
    %0 = arith.cmpi eq, %arg1, %c0_i32 : i32
    %1 = arith.extui %0 : i1 to i32
    %c0_i32_0 = arith.constant 0 : i32
    %2 = arith.cmpi ne, %1, %c0_i32_0 : i32
    scf.if %2 {
      %cst_15 = arith.constant 0.000000e+00 : f32
      %c0_16 = arith.constant 0 : index
      %44 = memref.load %arg6[%c0_16] : memref<1xf32, #tpu.memory_space<smem>>
      memref.store %cst_15, %arg6[%c0_16] : memref<1xf32, #tpu.memory_space<smem>>
    } else {
    }
    %c0 = arith.constant 0 : index
    %c0_1 = arith.constant 0 : index
    %3 = vector.load %arg2[%c0, %c0_1] : memref<8x32xf32, #tpu.memory_space<vmem>>, vector<8x32xf32>
    %c0_2 = arith.constant 0 : index
    %c0_3 = arith.constant 0 : index
    %4 = vector.load %arg3[%c0_2, %c0_3] : memref<8x1xi32, #tpu.memory_space<vmem>>, vector<8x1xi32>
    %cst = arith.constant dense<0xFF800000> : vector<8xf32>
    %5 = vector.multi_reduction <maximumf>, %3, %cst [1] : vector<8x32xf32> to vector<8xf32>
    %6 = vector.shape_cast %5 : vector<8xf32> to vector<8x1xf32>
    %7 = vector.broadcast %6 : vector<8x1xf32> to vector<8x32xf32>
    %8 = arith.subf %3, %7 : vector<8x32xf32>
    %9 = math.exp %8 : vector<8x32xf32>
    %cst_4 = arith.constant dense<0.000000e+00> : vector<8xf32>
    %10 = vector.multi_reduction <add>, %9, %cst_4 [1] : vector<8x32xf32> to vector<8xf32>
    %11 = vector.shape_cast %10 : vector<8xf32> to vector<8x1xf32>
    %12 = tpu.iota {dimensions = array<i32: 1>} : vector<1x32xi32>
    %13 = vector.broadcast %12 : vector<1x32xi32> to vector<8x32xi32>
    %14 = vector.broadcast %4 : vector<8x1xi32> to vector<8x32xi32>
    %15 = arith.cmpi eq, %13, %14 : vector<8x32xi32>
    %cst_5 = arith.constant 0.000000e+00 : f32
    %16 = vector.broadcast %cst_5 : f32 to vector<8x32xf32>
    %17 = arith.select %15, %8, %16 : vector<8x32xi1>, vector<8x32xf32>
    %cst_6 = arith.constant dense<0.000000e+00> : vector<8xf32>
    %18 = vector.multi_reduction <add>, %17, %cst_6 [1] : vector<8x32xf32> to vector<8xf32>
    %19 = vector.shape_cast %18 : vector<8xf32> to vector<8x1xf32>
    %20 = math.log %11 : vector<8x1xf32>
    %21 = arith.subf %20, %19 : vector<8x1xf32>
    %c0_7 = arith.constant 0 : index
    %c0_8 = arith.constant 0 : index
    %22 = vector.load %arg4[%c0_7, %c0_8] : memref<8x1xf32, #tpu.memory_space<vmem>>, vector<8x1xf32>
    %23 = arith.mulf %21, %22 : vector<8x1xf32>
    %c1_i32 = arith.constant 1 : i32
    %24 = arith.muli %arg0, %c1_i32 : i32
    %25 = arith.addi %24, %arg1 : i32
    %c8_i32 = arith.constant 8 : i32
    %26 = arith.muli %25, %c8_i32 : i32
    %27 = tpu.iota {dimensions = array<i32: 0>} : vector<8x1xi32>
    %28 = vector.broadcast %26 : i32 to vector<8x1xi32>
    %29 = arith.addi %28, %27 : vector<8x1xi32>
    %c13_i32 = arith.constant 13 : i32
    %30 = vector.broadcast %c13_i32 : i32 to vector<8x1xi32>
    %31 = arith.cmpi slt, %29, %30 : vector<8x1xi32>
    %cst_9 = arith.constant 0.000000e+00 : f32
    %32 = vector.broadcast %cst_9 : f32 to vector<8x1xf32>
    %33 = arith.select %31, %23, %32 : vector<8x1xi1>, vector<8x1xf32>
    %c0_10 = arith.constant 0 : index
    %34 = memref.load %arg6[%c0_10] : memref<1xf32, #tpu.memory_space<smem>>
    %35 = vector.shape_cast %33 : vector<8x1xf32> to vector<1x8x1xf32>
    %cst_11 = arith.constant dense<0.000000e+00> : vector<1xf32>
    %36 = vector.multi_reduction <add>, %35, %cst_11 [1, 2] : vector<1x8x1xf32> to vector<1xf32>
    %37 = vector.shape_cast %36 : vector<1xf32> to vector<1x1x1xf32>
    %38 = vector.extract %37[0, 0, 0] : f32 from vector<1x1x1xf32>
    %39 = arith.addf %34, %38 : f32
    %c0_12 = arith.constant 0 : index
    %40 = memref.load %arg6[%c0_12] : memref<1xf32, #tpu.memory_space<smem>>
    memref.store %39, %arg6[%c0_12] : memref<1xf32, #tpu.memory_space<smem>>
    %c0_i32_13 = arith.constant 0 : i32
    %41 = arith.cmpi eq, %arg1, %c0_i32_13 : i32
    %42 = arith.extui %41 : i1 to i32
    %c0_i32_14 = arith.constant 0 : i32
    %43 = arith.cmpi ne, %42, %c0_i32_14 : i32
    scf.if %43 {
      %44 = tpu.iota {dimensions = array<i32: 0>} : vector<8x128xi32>
      %45 = tpu.iota {dimensions = array<i32: 1>} : vector<8x128xi32>
      %c0_15 = arith.constant 0 : index
      %46 = memref.load %arg6[%c0_15] : memref<1xf32, #tpu.memory_space<smem>>
      %cst_16 = arith.constant 0.0769230798 : f32
      %47 = arith.mulf %46, %cst_16 : f32
      %c0_i32_17 = arith.constant 0 : i32
      %48 = vector.broadcast %c0_i32_17 : i32 to vector<8x128xi32>
      %49 = arith.cmpi eq, %44, %48 : vector<8x128xi32>
      %c0_i32_18 = arith.constant 0 : i32
      %50 = vector.broadcast %c0_i32_18 : i32 to vector<8x128xi32>
      %51 = arith.cmpi eq, %45, %50 : vector<8x128xi32>
      %52 = arith.andi %49, %51 : vector<8x128xi1>
      %cst_19 = arith.constant 0.000000e+00 : f32
      %53 = vector.broadcast %47 : f32 to vector<8x128xf32>
      %54 = vector.broadcast %cst_19 : f32 to vector<8x128xf32>
      %55 = arith.select %52, %53, %54 : vector<8x128xi1>, vector<8x128xf32>
      %c0_20 = arith.constant 0 : index
      %c0_21 = arith.constant 0 : index
      %56 = vector.load %arg5[%c0_20, %c0_21] : memref<8x128xf32, #tpu.memory_space<vmem>>, vector<8x128xf32>
      tpu.vector_store %arg5[%c0_20, %c0_21], %55 {strides = array<i32>} : memref<8x128xf32, #tpu.memory_space<vmem>>, vector<8x128xf32>,
    } else {
    }
    return
  }
  func.func @transform_0(%arg0: i32, %arg1: i32) -> (i32, i32) {
    %c1_i32 = arith.constant 1 : i32
    %0 = arith.muli %arg0, %c1_i32 : i32
    %1 = arith.addi %0, %arg1 : i32
    %c0_i32 = arith.constant 0 : i32
    %c0_i32_0 = arith.constant 0 : i32
    return %1, %c0_i32 : i32, i32
  }
  func.func @transform_1(%arg0: i32, %arg1: i32) -> (i32, i32) {
    %c1_i32 = arith.constant 1 : i32
    %0 = arith.muli %arg0, %c1_i32 : i32
    %1 = arith.addi %0, %arg1 : i32
    %c0_i32 = arith.constant 0 : i32
    %c0_i32_0 = arith.constant 0 : i32
    return %1, %c0_i32 : i32, i32
  }
  func.func @transform_2(%arg0: i32, %arg1: i32) -> (i32, i32) {
    %c1_i32 = arith.constant 1 : i32
    %0 = arith.muli %arg0, %c1_i32 : i32
    %1 = arith.addi %0, %arg1 : i32
    %c0_i32 = arith.constant 0 : i32
    %c0_i32_0 = arith.constant 0 : i32
    return %1, %c0_i32 : i32, i32
  }
  func.func @transform_3(%arg0: i32, %arg1: i32) -> (i32, i32) {
    %c0_i32 = arith.constant 0 : i32
    %c0_i32_0 = arith.constant 0 : i32
    return %arg0, %c0_i32 : i32, i32
  }
}

</mosaic_0001>

<bundles_post_ra>
// kernel: tpu_custom_call.1
= control target key start
LH: loop header
LB: loop body
LE: loop exit
PB: predicated region body
PF: predicated region fallthrough
CT: control target
= control target key end

     0   :  { %8 = vsyncpa [#allocation4], 0  ;;  %s702_s0 = inlined_call_operand.vmem [shape: f32[13,32], index: 0, kind: input, shape index: {}]   ;;  %s703_s1 = inlined_call_operand.vmem [shape: s32[13,1], index: 1, kind: input, shape index: {}]   ;;  %s704_s2 = inlined_call_operand.vmem [shape: f32[13,1], index: 2, kind: input, shape index: {}]   ;;  %s705_s3 = inlined_call_operand.hbm [shape: f32[16,128], index: 3, kind: output, shape index: {}]  }
   0x1   :  { %10 = vsyncpa [#allocation4 + $0x1], 0  ;;  %s582_s12 = smov 0   ;;  %s584_s13 = smov 0  }
   0x2   :  { %s586_s14 = smov 0   ;;  %s588_s15 = smov 0  }
   0x3   :  { %s590_s16 = smov 0   ;;  %s592_s17 = smov 0  }
   0x4 LB: > { %s405_s18 = sadd.s32 4294967295, %s558_s17   ;;  %s406_s19 = sadd.s32 4294967294, %s558_s17   ;;  %s558_s17 = sphi %s592_s17, %s16_s17   ;;  %s554_s16 = sphi %s590_s16, %s712_s16   ;;  %s550_s15 = sphi %s588_s15, %s711_s15   ;;  %s546_s14 = sphi %s586_s14, %s710_s14   ;;  %s542_s13 = sphi %s584_s13, %s709_s13   ;;  %s538_s12 = sphi %s582_s12, %s708_s12  }
   0x5   : > { %s28_s20 = sadd.s32 1, %s554_s16  ;;  %s119_s21 = sadd.s32 1, %s546_s14 }
   0x6   : > { %p30_p0 = scmp.ge.s32.totalorder %s28_s20, 2  ;;  %p129_p1 = scmp.ne.s32.totalorder %s546_s14, %s542_s13 }
   0x7   : > { %p130_p2 = scmp.eq.s32.totalorder %s405_s18, 1  ;;  %p135_p3 = scmp.ne.s32.totalorder %s542_s13, %s538_s12 }
   0x8   : > { %s714_s20 = smov (%p30_p0, %s28_s20), 0  ;;  %p136_p5 = scmp.eq.s32.totalorder %s406_s19, 1 }
   0x9   : > { %p622_p4 = por %p130_p2, %p129_p1  ;;  %s116_s23 = ssub.s32 %s554_s16, %s714_s20 }
   0xa   : > { %p409_p6 = scmp.ge.s32.totalorder %s558_s17, 1  ;;  %p117_p7 = scmp.eq.s32.totalorder %s116_s23, 0 }
   0xb   : > { %p629_p8 = por %p136_p5, %p135_p3  ;;  %p181_p9 = scmp.lt.s32.totalorder %s558_s17, 3 }
   0xc   : > { %s635_s25 = scalar_select %p117_p7, %s546_s14, %s119_s21  }
   0xd   : > { %p182_p10 = pnand %p409_p6, %p181_p9 }
   0xe   : > { %p216_p11 = scmp.lt.s32.totalorder (!%p182_p10), %s550_s15, 1  ;;  %s414_s7 = sshll.u32 (!%p182_p10), %s550_s15, 3 }
   0xf   : > { %185 = sbr.rel (%p182_p10) target bundleno = 560 (0x230), region = 32  ;;  %s212_s11 = sand.u32 (!%p182_p10), 1, %s542_s13  }
  0x10   : > { %s410_s18 = sshll.u32 (!%p182_p10), %s212_s11, 3  ;;  %s416_s19 = sshll.u32 (!%p182_p10), %s550_s15, 7 }
  0x11   : > { %s214_s23 = scalar_lea.vmem (!%p182_p10), [#allocation3], %s410_s18  ;;  %s301_s4 = scalar_lea.sflag (!%p182_p10), [#allocation4], %s212_s11 }
  0x14   : > { %v560_v0 = vmov 0   ;;  %s217_s26 = scalar_select %p216_p11, %s550_s15, 1  ;;  %vm241_vm0 = vcmask 261120   ;;  %v251_v7 = vlaneseq  ;;  %v270_v16 = vstv %s414_s7 }
  0x15   : > { %477 = vset.pattern.permute.xlu0 %v560_v0  ;;  %vm275_vm3 = vcmask 7168   ;;  %s561_s15 = smov [#allocation3]  }
  0x16   : > { %s639_s27 = sshll.u32 %s217_s26, 3  ;;  %v252_v8 = vand.u32 127, %v251_v7  ;;  %v269_v15 = vshrl.u32 %v251_v7, 7  ;;  %s314_s26 = sshll.u32 %s214_s23, 4  ;;  %s315_s26 = int_to_ptr.vmem [resolvable:$true] %s314_s26 }
  0x17   : > { %s219_s30 = scalar_lea.vmem %s702_s0, %s639_s27  ;;  %s225_s6 = scalar_lea.vmem %s703_s1, %s639_s27 }
  0x18   : > { %v239_v1 = vld [vmem:[%s219_s30] sm:$0xff]  ;;  %s231_s10 = scalar_lea.vmem %s704_s2, %s639_s27  ;;  %v271_v18 = vadd.s32 %v270_v16, %v269_v15  ;;  %vm294_vm4 = vcmp.eq.s32.totalorder %v269_v15, 0  ;;  %vm295_vm5 = vcmp.eq.s32.totalorder %v252_v8, 0  ;;  %s662_s30 = scalar_lea.hbm %s705_s3, %s416_s19 }
  0x19   : > { %v242_v2 = vsel %vm241_vm0, %v239_v1, -inf  ;;  %v240_v3 = vld [vmem:[%s225_s6] sm:$0xff]  ;;  %vm296_vm6 = vmand %vm294_vm4, %vm295_vm5  ;;  %s482_s5 = scalar_lea.vmem %s315_s26, 128  ;;  %s486_s6 = sshll.u32 %s561_s15, 4  ;;  %s487_s6 = int_to_ptr.vmem [resolvable:$false] %s486_s6 }
  0x1a   : > { %243 = vmax.xlane.f32.xlu0 %v242_v2  ;;  %v264_v20 = vld [vmem:[%s231_s10] sm:$0xff]  ;;  %vm272_vm2 = vcmp.lt.s32.totalorder %v271_v18, 13  ;;  %p483_p12 = scmp.ne.s32.totalorder %s315_s26, %s482_s5  ;;  %s488_s7 = scalar_lea.vmem %s487_s6, 256 }
  0x1b   : > { %p489_p1 = scmp.lt.s32.totalorder %s315_s26, %s487_s6  ;;  %p490_p2 = scmp.lt.s32.totalorder %s488_s7, %s482_s5 }
  0x1c   : > { %p484_p13 = pnand %p483_p12, %p622_p4 }
  0x1d   : > { %p491_p3 = por %p490_p2, %p489_p1 }
  0x1e   : > { %p485_p0 = pneg %p484_p13 }
  0x20   : > { %p492_p5 = pnand %p491_p3, %p485_p0 }
  0x30   : > { %254 = vperm.xlu0 %477, %v240_v3  }
  0xa3   : > { %v244_v4 = vpop.xlane.xlu0 %243 }
  0xa4   : > { %v245_v5 = vsub.f32 %v239_v1, %v244_v4 }
  0xa6   : > { %v246_v6 = vmul.f32 1.442695, %v245_v5 }
  0xa8   : > { %478 = vpow2.f32 %v246_v6 }
  0xab   : > { %v255_v9 = vpop.permute.xlu0 %254 }
  0xac   : > { %vm256_vm1 = vcmp.eq.s32.totalorder %v252_v8, %v255_v9 }
  0xad   : > { %v257_v12 = vsel %vm256_vm1, %v245_v5, 0.0 }
  0xae   : > { %v258_v13 = vsel %vm241_vm0, %v257_v12, 0.0 }
  0xb5   : > { %v479_v10 = vpop.eup %478 }
  0xb6   : > { %v248_v11 = vsel %vm241_vm0, %v479_v10, 0.0 }
  0xb7   : > { %249 = vadd.xlane.f32.xlu1 %v248_v11 }
  0xbb   : > { %259 = vadd.xlane.f32.xlu1 %v258_v13 }
 0x140   : > { %v250_v14 = vpop.xlane.xlu1 %249 }
 0x141   : > { %480 = vlog2.f32 %v250_v14 }
 0x144   : > { %v260_v21 = vpop.xlane.xlu1 %259 }
 0x14e   : > { %v481_v17 = vpop.eup %480 }
 0x14f   : > { %v262_v19 = vmul.f32 0.6931472, %v481_v17 }
 0x151   : > { %v263_v22 = vsub.f32 %v262_v19, %v260_v21 }
 0x153   : > { %v265_v23 = vmul.f32 %v264_v20, %v263_v22 }
 0x155   : > { %v273_v24 = vsel %vm272_vm2, %v265_v23, 0.0 }
 0x156   : > { %v276_v25 = vsel %vm275_vm3, %v273_v24, 0.0 }
 0x157   : > { %277 = vadd.xlane.f32.xlu1 %v276_v25 }
 0x1e0   : > { %v278_v26 = vpop.xlane.xlu1 %277 }
 0x1e1   : > { %v279_v27 = vrot.slane %v278_v26, 4 }
 0x1e3   : > { %v280_v28 = vadd.f32 %v279_v27, %v278_v26 }
 0x1e5   : > { %v281_v29 = vrot.slane %v280_v28, 2 }
 0x1e7   : > { %v282_v30 = vadd.f32 %v281_v29, %v280_v28 }
 0x1e9   : > { %v283_v31 = vrot.slane %v282_v30, 1 }
 0x1eb   : > { %v284_v32 = vadd.f32 %v283_v31, %v282_v30 }
 0x1ed   : > { %419 = vpush %v284_v32 }
 0x21e   : > { %s420_s21 = spop %419 }
 0x21f   : > { %s293_s27 = smul.f32 0.07692308, %s420_s21 }
 0x221   : > { %v297_v33 = vstv %s293_s27 }
 0x222   : > { %v298_v34 = vsel %vm296_vm6, %v297_v33, 0.0 }
 0x223   : > { %299 = vst [vmem:[%s214_s23] sm:$0xff] %v298_v34 }
 0x224   : > { %495 = shalt.err (!%p492_p5)
}
 0x225   : > { %s496_s8 = scalar_lea.hbm %s662_s30, 128  ;;  %s500_s11 = scalar_lea.hbm %s705_s3, 256 }
 0x226   : > { %p497_p6 = scmp.ne.s32.totalorder %s662_s30, %s496_s8  ;;  %p501_p10 = scmp.lt.s32.totalorder %s662_s30, %s705_s3 }
 0x227   : > { %p502_p11 = scmp.lt.s32.totalorder %s500_s11, %s496_s8 }
 0x228   : > { %p498_p7 = pnand %p497_p6, %p622_p4 }
 0x229   : > { %p503_p12 = por %p502_p11, %p501_p10 }
 0x22a   : > { %p499_p9 = pneg %p498_p7 }
 0x22c   : > { %p504_p13 = pnand %p503_p12, %p499_p9 }
 0x22e   : > { %507 = shalt.err (!%p504_p13)
}
 0x22f   : > { %421 = dma.vmem_to_hbm [thread:$0]  (%p622_p4), %s315_s26, 128, %s662_s30, %s301_s4  }
 0x230 PF: > { %p427_p0 = scmp.ge.s32.totalorder %s558_s17, 2  ;;  %s326_s21 = sand.u32 1, %s538_s12  }
 0x231   : > { %s327_s23 = scalar_lea.sflag [#allocation4], %s326_s21 }
 0x232   : > { %p424_p1 = pnand %p427_p0, %p629_p8 }
 0x234   : > { %p425_p2 = pneg %p424_p1 }
 0x236   : > { %533 = dma.done.wait (%p425_p2), %s327_s23, 128  }
 0x237   : > { %535 = vsyncadd (%p425_p2), %s327_s23, 4294967168  ;;  %s16_s17 = sadd.s32 1, %s558_s17   ;;  %s708_s12 = smov %s542_s13 }
 0x238   : > { %p13_p3 = scmp.ge.s32.totalorder %s16_s17, 4   ;;  %s709_s13 = smov %s546_s14 }
 0x239   : > { %s710_s14 = smov %s635_s25  ;;  %s711_s15 = smov %s554_s16 }
 0x23a   : > { %s712_s16 = smov %s714_s20  ;;  %15 = sbr.rel (!%p13_p3) target bundleno = 4 (0x4), region = 83 }
 0x23f   :  { %332 = vsyncpa [#allocation4], 1 }
 0x240   :  { %334 = vsyncpa [#allocation4 + $0x1], 1 }

</bundles_post_ra>
